<compile_context>
chip_gen: v5e
topology: v5e:2x2
jax: 0.10.0
libtpu: 0.0.40
codegen_flags: <defaults>
</compile_context>

<pallas_src>
import jax
import jax.numpy as jnp
from jax import lax
from jax.experimental import pallas as pl
from jax.experimental.pallas import tpu as pltpu

# Fixed by the PyTorch module (n_input=1, n_channel=32, n_output=10, length 971).
L_IN = 971
K = 3
L_CONV = L_IN - K + 1          # 969
POOL1 = 8                      # MaxPool1d(8)
L_POOL = L_CONV // POOL1       # 121 pooled windows (trailing element dropped)
N_WIN = L_CONV - POOL1 + 1     # 962 valid rolling-max positions
N_CH = 32
N_OUT = 10
EPS = 1e-5                     # BatchNorm default eps


def convnet_kernel(x_ref, bn0_ref, cw_ref, cb_ref, g1_ref, b1_ref,
                   fw_ref, fb_ref, out_ref):
    batch = x_ref.shape[0]

    # ---- bn0: BatchNorm1d(1), training-mode batch statistics (two-pass) ----
    x = x_ref[...]                                      # (B, 971) f32
    mu0 = jnp.mean(x)
    d0 = x - mu0
    var0 = jnp.mean(d0 * d0)                            # biased variance
    a0 = bn0_ref[0] * lax.rsqrt(var0 + EPS)             # gamma0 (SMEM scalar)
    c0 = bn0_ref[1] - mu0 * a0                          # beta0  (SMEM scalar)
    xn = x * a0 + c0                                    # (B, 971)

    # ---- hoisted conv tap views (batch=sublane, time=lane), used by all 32 channels ----
    x0 = xn[:, 0:L_CONV]                                # (B, 969)
    x1 = xn[:, 1:1 + L_CONV]
    x2 = xn[:, 2:2 + L_CONV]

    # Global tap sums -> exact closed-form per-channel conv mean (no cancellation).
    s0 = jnp.sum(x0)
    s1 = jnp.sum(x1)
    s2 = jnp.sum(x2)
    inv_n = 1.0 / (batch * L_CONV)

    # Hoisted window-start weights: 1/121 at lanes t with t % 8 == 0 (the 121
    # MaxPool window starts), 0 elsewhere. Folds the avg-pool into one multiply.
    win_iota = lax.broadcasted_iota(jnp.int32, (batch, N_WIN), 1)
    win_w = jnp.where((win_iota & (POOL1 - 1)) == 0, 1.0 / L_POOL, 0.0)
    # Hoisted channel one-hot iota for scattering pooled features (no dynamic stores).
    ch_iota = lax.broadcasted_iota(jnp.int32, (batch, N_CH), 1)

    def body(c, feat):
        # Scalar parameter reads from SMEM (dynamic scalar indices).
        w0 = cw_ref[3 * c]
        w1 = cw_ref[3 * c + 1]
        w2 = cw_ref[3 * c + 2]
        bc = cb_ref[c]

        # conv1 output channel c for the whole batch: (B, 969), pure VPU FMAs.
        y = w0 * x0 + w1 * x1 + w2 * x2 + bc

        # bn1 (BatchNorm1d(32), training-mode biased stats).
        # Mean via closed form (exact); variance two-pass on centered values.
        mu1 = (w0 * s0 + w1 * s1 + w2 * s2) * inv_n + bc
        d = y - mu1
        var1 = jnp.sum(d * d) * inv_n
        scale = g1_ref[c] * lax.rsqrt(var1 + EPS)
        z = jnp.tanh(d * scale + b1_ref[c])              # (B, 969)

        # MaxPool1d(8) in-layout: 3-level rolling max via lane-shifted slices.
        m1 = jnp.maximum(z[:, :L_CONV - 1], z[:, 1:])    # max over 2
        m2 = jnp.maximum(m1[:, :L_CONV - 3], m1[:, 2:])  # max over 4
        m4 = jnp.maximum(m2[:, :N_WIN], m2[:, 4:])       # m4[t] = max z[t:t+8]

        # avg_pool1d over the 121 window maxima (mask + 1/121 folded into win_w).
        pooled = jnp.sum(m4 * win_w, axis=1, keepdims=True)   # (B, 1)

        # Accumulate into column c of the pooled-feature matrix via one-hot select.
        return feat + jnp.where(ch_iota == c, pooled, 0.0)

    feat = lax.fori_loop(0, N_CH, body, jnp.zeros((batch, N_CH), jnp.float32))

    # ---- batched classifier head: one MXU dot, one log_softmax, one store ----
    logits = jnp.dot(feat, fw_ref[...],
                     preferred_element_type=jnp.float32) + fb_ref[...]   # (B, 10)
    m = jnp.max(logits, axis=1, keepdims=True)
    zc = logits - m
    lse = jnp.log(jnp.sum(jnp.exp(zc), axis=1, keepdims=True))
    out_ref[...] = (zc - lse).astype(out_ref.dtype)


def convnet_forward(x, params):
    """x: (B, 971) (or anything reshapeable to (B, 1, 971)). Returns (B, 1, 10)."""
    g0, b0, conv_w, conv_b, g1, b1, fc_w, fc_b = params
    batch = x.shape[0]
    x = x.reshape(batch, L_IN).astype(jnp.float32)

    # Parameter plumbing (plain-JAX glue). Small per-channel params go to SMEM
    # (scalar reads inside the channel loop); FC weights stay in VMEM for the MXU.
    bn0 = jnp.stack([g0[0], b0[0]]).astype(jnp.float32)       # (2,)   [gamma0, beta0]
    cw = conv_w[:, 0, :].reshape(-1).astype(jnp.float32)      # (96,)  flat conv weights
    cb = conv_b.astype(jnp.float32)                           # (32,)
    g1v = g1.astype(jnp.float32)                              # (32,)
    b1v = b1.astype(jnp.float32)                              # (32,)
    fw = fc_w.T.astype(jnp.float32)                           # (32, 10)
    fb = fc_b[None, :].astype(jnp.float32)                    # (1, 10)

    vmem = pl.BlockSpec(memory_space=pltpu.MemorySpace.VMEM)
    smem = pl.BlockSpec(memory_space=pltpu.MemorySpace.SMEM)

    out = pl.pallas_call(
        convnet_kernel,
        out_shape=jax.ShapeDtypeStruct((batch, N_OUT), jnp.float32),
        in_specs=[vmem, smem, smem, smem, smem, smem, vmem, vmem],
        out_specs=vmem,
    )(x, bn0, cw, cb, g1v, b1v, fw, fb)
    return out[:, None, :]                                    # (B, 1, 10)


def init_params(key):
    """Deterministic synthetic parameters matching the PyTorch module's shapes."""
    ks = jax.random.split(key, 8)
    gamma0 = 1.0 + 0.1 * jax.random.normal(ks[0], (1,), jnp.float32)
    beta0 = 0.1 * jax.random.normal(ks[1], (1,), jnp.float32)
    conv_w = 0.3 * jax.random.normal(ks[2], (N_CH, 1, K), jnp.float32)   # Conv1d weight
    conv_b = 0.1 * jax.random.normal(ks[3], (N_CH,), jnp.float32)
    gamma1 = 1.0 + 0.1 * jax.random.normal(ks[4], (N_CH,), jnp.float32)
    beta1 = 0.1 * jax.random.normal(ks[5], (N_CH,), jnp.float32)
    fc_w = 0.2 * jax.random.normal(ks[6], (N_OUT, N_CH), jnp.float32)    # Linear weight
    fc_b = 0.1 * jax.random.normal(ks[7], (N_OUT,), jnp.float32)
    return (gamma0, beta0, conv_w, conv_b, gamma1, beta1, fc_w, fc_b)


def convnet_ref(x, params):
    """Pure-JAX reference mirroring the PyTorch forward (training-mode BN)."""
    g0, b0, conv_w, conv_b, g1, b1, fc_w, fc_b = params
    batch = x.shape[0]
    xr = x.reshape(batch, 1, L_IN).astype(jnp.float32)
    mu0 = jnp.mean(xr)
    var0 = jnp.mean((xr - mu0) ** 2)
    xn = (xr - mu0) / jnp.sqrt(var0 + EPS) * g0[None, :, None] + b0[None, :, None]
    y = sum(conv_w[None, :, 0, j, None] * xn[:, :, j:j + L_CONV] for j in range(K))
    y = y + conv_b[None, :, None]                                     # (B, 32, 969)
    mu1 = jnp.mean(y, axis=(0, 2), keepdims=True)
    var1 = jnp.mean((y - mu1) ** 2, axis=(0, 2), keepdims=True)
    y = (y - mu1) / jnp.sqrt(var1 + EPS) * g1[None, :, None] + b1[None, :, None]
    y = jnp.tanh(y)
    y = y[:, :, :L_POOL * POOL1].reshape(batch, N_CH, L_POOL, POOL1).max(axis=-1)
    y = jnp.mean(y, axis=-1)                                          # (B, 32)
    logits = jnp.sum(y[:, None, :] * fc_w[None, :, :], axis=2) + fc_b[None, :]
    logits = logits[:, None, :]                                       # (B, 1, 10)
    return jax.nn.log_softmax(logits, axis=2)


if __name__ == "__main__":
    key = jax.random.PRNGKey(0)
    pkey, xkey = jax.random.split(key)
    params = init_params(pkey)

    B = 2
    x = jax.random.normal(xkey, (B, L_IN), dtype=jnp.float32)

    out = convnet_forward(x, params)
    out = jax.block_until_ready(out)
    assert out.shape == (B, 1, N_OUT), out.shape

    ref = jax.block_until_ready(convnet_ref(x, params))
    err = float(jnp.max(jnp.abs(out - ref)))
    assert err < 2e-3, f"max abs err vs reference: {err}"

    print("KERNEL_OK")
</pallas_src>

<mosaic_0001>
module attributes {stable_mosaic.version = 11 : i64} {
  func.func @convnet_kernel(%arg0: memref<2x971xf32, #tpu.memory_space<vmem>>, %arg1: memref<2xf32, #tpu.memory_space<smem>>, %arg2: memref<96xf32, #tpu.memory_space<smem>>, %arg3: memref<32xf32, #tpu.memory_space<smem>>, %arg4: memref<32xf32, #tpu.memory_space<smem>>, %arg5: memref<32xf32, #tpu.memory_space<smem>>, %arg6: memref<32x10xf32, #tpu.memory_space<vmem>>, %arg7: memref<1x10xf32, #tpu.memory_space<vmem>>, %arg8: memref<2x10xf32, #tpu.memory_space<vmem>>) attributes {dimension_semantics = [], scalar_prefetch = 0 : i64, scratch_operands = 0 : i64, tpu.core_type = #tpu.core_type<tc>} {
    %c0 = arith.constant 0 : index
    %c0_0 = arith.constant 0 : index
    %0 = vector.load %arg0[%c0, %c0_0] : memref<2x971xf32, #tpu.memory_space<vmem>>, vector<2x971xf32>
    %1 = vector.shape_cast %0 : vector<2x971xf32> to vector<1x2x971xf32>
    %cst = arith.constant dense<0.000000e+00> : vector<1xf32>
    %2 = vector.multi_reduction <add>, %1, %cst [1, 2] : vector<1x2x971xf32> to vector<1xf32>
    %3 = vector.shape_cast %2 : vector<1xf32> to vector<1x1x1xf32>
    %4 = vector.extract %3[0, 0, 0] : f32 from vector<1x1x1xf32>
    %cst_1 = arith.constant 1.942000e+03 : f32
    %5 = arith.divf %4, %cst_1 : f32
    %6 = vector.broadcast %5 : f32 to vector<2x971xf32>
    %7 = arith.subf %0, %6 : vector<2x971xf32>
    %8 = arith.mulf %7, %7 : vector<2x971xf32>
    %9 = vector.shape_cast %8 : vector<2x971xf32> to vector<1x2x971xf32>
    %cst_2 = arith.constant dense<0.000000e+00> : vector<1xf32>
    %10 = vector.multi_reduction <add>, %9, %cst_2 [1, 2] : vector<1x2x971xf32> to vector<1xf32>
    %11 = vector.shape_cast %10 : vector<1xf32> to vector<1x1x1xf32>
    %12 = vector.extract %11[0, 0, 0] : f32 from vector<1x1x1xf32>
    %cst_3 = arith.constant 1.942000e+03 : f32
    %13 = arith.divf %12, %cst_3 : f32
    %c0_4 = arith.constant 0 : index
    %14 = memref.load %arg1[%c0_4] : memref<2xf32, #tpu.memory_space<smem>>
    %cst_5 = arith.constant 9.99999974E-6 : f32
    %15 = arith.addf %13, %cst_5 : f32
    %16 = math.rsqrt %15 : f32
    %17 = arith.mulf %14, %16 : f32
    %c1 = arith.constant 1 : index
    %18 = memref.load %arg1[%c1] : memref<2xf32, #tpu.memory_space<smem>>
    %19 = arith.mulf %5, %17 : f32
    %20 = arith.subf %18, %19 : f32
    %21 = vector.broadcast %17 : f32 to vector<2x971xf32>
    %22 = arith.mulf %0, %21 : vector<2x971xf32>
    %23 = vector.broadcast %20 : f32 to vector<2x971xf32>
    %24 = arith.addf %22, %23 : vector<2x971xf32>
    %25 = vector.extract_strided_slice %24 {offsets = [0, 0], sizes = [2, 969], strides = [1, 1]} : vector<2x971xf32> to vector<2x969xf32>
    %26 = vector.extract_strided_slice %24 {offsets = [0, 1], sizes = [2, 969], strides = [1, 1]} : vector<2x971xf32> to vector<2x969xf32>
    %27 = vector.extract_strided_slice %24 {offsets = [0, 2], sizes = [2, 969], strides = [1, 1]} : vector<2x971xf32> to vector<2x969xf32>
    %28 = vector.shape_cast %25 : vector<2x969xf32> to vector<1x2x969xf32>
    %cst_6 = arith.constant dense<0.000000e+00> : vector<1xf32>
    %29 = vector.multi_reduction <add>, %28, %cst_6 [1, 2] : vector<1x2x969xf32> to vector<1xf32>
    %30 = vector.shape_cast %29 : vector<1xf32> to vector<1x1x1xf32>
    %31 = vector.extract %30[0, 0, 0] : f32 from vector<1x1x1xf32>
    %32 = vector.shape_cast %26 : vector<2x969xf32> to vector<1x2x969xf32>
    %cst_7 = arith.constant dense<0.000000e+00> : vector<1xf32>
    %33 = vector.multi_reduction <add>, %32, %cst_7 [1, 2] : vector<1x2x969xf32> to vector<1xf32>
    %34 = vector.shape_cast %33 : vector<1xf32> to vector<1x1x1xf32>
    %35 = vector.extract %34[0, 0, 0] : f32 from vector<1x1x1xf32>
    %36 = vector.shape_cast %27 : vector<2x969xf32> to vector<1x2x969xf32>
    %cst_8 = arith.constant dense<0.000000e+00> : vector<1xf32>
    %37 = vector.multi_reduction <add>, %36, %cst_8 [1, 2] : vector<1x2x969xf32> to vector<1xf32>
    %38 = vector.shape_cast %37 : vector<1xf32> to vector<1x1x1xf32>
    %39 = vector.extract %38[0, 0, 0] : f32 from vector<1x1x1xf32>
    %40 = tpu.iota {dimensions = array<i32: 1>} : vector<2x962xi32>
    %c7_i32 = arith.constant 7 : i32
    %41 = vector.broadcast %c7_i32 : i32 to vector<2x962xi32>
    %42 = arith.andi %40, %41 : vector<2x962xi32>
    %c0_i32 = arith.constant 0 : i32
    %43 = vector.broadcast %c0_i32 : i32 to vector<2x962xi32>
    %44 = arith.cmpi eq, %42, %43 : vector<2x962xi32>
    %cst_9 = arith.constant 0.00826446246 : f32
    %cst_10 = arith.constant 0.000000e+00 : f32
    %45 = vector.broadcast %cst_9 : f32 to vector<2x962xf32>
    %46 = vector.broadcast %cst_10 : f32 to vector<2x962xf32>
    %47 = arith.select %44, %45, %46 : vector<2x962xi1>, vector<2x962xf32>
    %48 = tpu.iota {dimensions = array<i32: 1>} : vector<2x32xi32>
    %cst_11 = arith.constant 0.000000e+00 : f32
    %49 = vector.broadcast %cst_11 : f32 to vector<2x32xf32>
    %c0_i32_12 = arith.constant 0 : i32
    %c32_i32 = arith.constant 32 : i32
    %50 = arith.addi %c0_i32_12, %c32_i32 : i32
    %c1_i32 = arith.constant 1 : i32
    %51 = scf.for %arg9 = %c0_i32_12 to %50 step %c1_i32 iter_args(%arg10 = %49) -> (vector<2x32xf32>)  : i32 {
      %c3_i32 = arith.constant 3 : i32
      %68 = arith.muli %c3_i32, %arg9 : i32
      %69 = arith.index_cast %68 : i32 to index
      %70 = memref.load %arg2[%69] : memref<96xf32, #tpu.memory_space<smem>>
      %c3_i32_23 = arith.constant 3 : i32
      %71 = arith.muli %c3_i32_23, %arg9 : i32
      %c1_i32_24 = arith.constant 1 : i32
      %72 = arith.addi %71, %c1_i32_24 : i32
      %73 = arith.index_cast %72 : i32 to index
      %74 = memref.load %arg2[%73] : memref<96xf32, #tpu.memory_space<smem>>
      %c3_i32_25 = arith.constant 3 : i32
      %75 = arith.muli %c3_i32_25, %arg9 : i32
      %c2_i32 = arith.constant 2 : i32
      %76 = arith.addi %75, %c2_i32 : i32
      %77 = arith.index_cast %76 : i32 to index
      %78 = memref.load %arg2[%77] : memref<96xf32, #tpu.memory_space<smem>>
      %79 = arith.index_cast %arg9 : i32 to index
      %80 = memref.load %arg3[%79] : memref<32xf32, #tpu.memory_space<smem>>
      %81 = vector.broadcast %70 : f32 to vector<2x969xf32>
      %82 = arith.mulf %81, %25 : vector<2x969xf32>
      %83 = vector.broadcast %74 : f32 to vector<2x969xf32>
      %84 = arith.mulf %83, %26 : vector<2x969xf32>
      %85 = arith.addf %82, %84 : vector<2x969xf32>
      %86 = vector.broadcast %78 : f32 to vector<2x969xf32>
      %87 = arith.mulf %86, %27 : vector<2x969xf32>
      %88 = arith.addf %85, %87 : vector<2x969xf32>
      %89 = vector.broadcast %80 : f32 to vector<2x969xf32>
      %90 = arith.addf %88, %89 : vector<2x969xf32>
      %91 = arith.mulf %70, %31 : f32
      %92 = arith.mulf %74, %35 : f32
      %93 = arith.addf %91, %92 : f32
      %94 = arith.mulf %78, %39 : f32
      %95 = arith.addf %93, %94 : f32
      %cst_26 = arith.constant 5.15995896E-4 : f32
      %96 = arith.mulf %95, %cst_26 : f32
      %97 = arith.addf %96, %80 : f32
      %98 = vector.broadcast %97 : f32 to vector<2x969xf32>
      %99 = arith.subf %90, %98 : vector<2x969xf32>
      %100 = arith.mulf %99, %99 : vector<2x969xf32>
      %101 = vector.shape_cast %100 : vector<2x969xf32> to vector<1x2x969xf32>
      %cst_27 = arith.constant dense<0.000000e+00> : vector<1xf32>
      %102 = vector.multi_reduction <add>, %101, %cst_27 [1, 2] : vector<1x2x969xf32> to vector<1xf32>
      %103 = vector.shape_cast %102 : vector<1xf32> to vector<1x1x1xf32>
      %104 = vector.extract %103[0, 0, 0] : f32 from vector<1x1x1xf32>
      %cst_28 = arith.constant 5.15995896E-4 : f32
      %105 = arith.mulf %104, %cst_28 : f32
      %106 = arith.index_cast %arg9 : i32 to index
      %107 = memref.load %arg4[%106] : memref<32xf32, #tpu.memory_space<smem>>
      %cst_29 = arith.constant 9.99999974E-6 : f32
      %108 = arith.addf %105, %cst_29 : f32
      %109 = math.rsqrt %108 : f32
      %110 = arith.mulf %107, %109 : f32
      %111 = vector.broadcast %110 : f32 to vector<2x969xf32>
      %112 = arith.mulf %99, %111 : vector<2x969xf32>
      %113 = arith.index_cast %arg9 : i32 to index
      %114 = memref.load %arg5[%113] : memref<32xf32, #tpu.memory_space<smem>>
      %115 = vector.broadcast %114 : f32 to vector<2x969xf32>
      %116 = arith.addf %112, %115 : vector<2x969xf32>
      %117 = math.tanh %116 : vector<2x969xf32>
      %118 = vector.extract_strided_slice %117 {offsets = [0, 0], sizes = [2, 968], strides = [1, 1]} : vector<2x969xf32> to vector<2x968xf32>
      %119 = vector.extract_strided_slice %117 {offsets = [0, 1], sizes = [2, 968], strides = [1, 1]} : vector<2x969xf32> to vector<2x968xf32>
      %120 = arith.maximumf %118, %119 : vector<2x968xf32>
      %121 = vector.extract_strided_slice %120 {offsets = [0, 0], sizes = [2, 966], strides = [1, 1]} : vector<2x968xf32> to vector<2x966xf32>
      %122 = vector.extract_strided_slice %120 {offsets = [0, 2], sizes = [2, 966], strides = [1, 1]} : vector<2x968xf32> to vector<2x966xf32>
      %123 = arith.maximumf %121, %122 : vector<2x966xf32>
      %124 = vector.extract_strided_slice %123 {offsets = [0, 0], sizes = [2, 962], strides = [1, 1]} : vector<2x966xf32> to vector<2x962xf32>
      %125 = vector.extract_strided_slice %123 {offsets = [0, 4], sizes = [2, 962], strides = [1, 1]} : vector<2x966xf32> to vector<2x962xf32>
      %126 = arith.maximumf %124, %125 : vector<2x962xf32>
      %127 = arith.mulf %126, %47 : vector<2x962xf32>
      %cst_30 = arith.constant dense<0.000000e+00> : vector<2xf32>
      %128 = vector.multi_reduction <add>, %127, %cst_30 [1] : vector<2x962xf32> to vector<2xf32>
      %129 = vector.shape_cast %128 : vector<2xf32> to vector<2x1xf32>
      %130 = vector.broadcast %arg9 : i32 to vector<2x32xi32>
      %131 = arith.cmpi eq, %48, %130 : vector<2x32xi32>
      %cst_31 = arith.constant 0.000000e+00 : f32
      %132 = vector.shape_cast %129 : vector<2x1xf32> to vector<2x1xf32>
      %133 = vector.broadcast %132 : vector<2x1xf32> to vector<2x32xf32>
      %134 = vector.broadcast %cst_31 : f32 to vector<2x32xf32>
      %135 = arith.select %131, %133, %134 : vector<2x32xi1>, vector<2x32xf32>
      %136 = arith.addf %arg10, %135 : vector<2x32xf32>
      scf.yield %136 : vector<2x32xf32>
    }
    %c32_i32_13 = arith.constant 32 : i32
    %c0_14 = arith.constant 0 : index
    %c0_15 = arith.constant 0 : index
    %52 = vector.load %arg6[%c0_14, %c0_15] : memref<32x10xf32, #tpu.memory_space<vmem>>, vector<32x10xf32>
    %cst_16 = arith.constant dense<0.000000e+00> : vector<2x10xf32>
    %53 = tpu.matmul %51, %52, %cst_16 {dimension_numbers = #tpu.dot_dimension_numbers<[1], [0], [0], [1], [0, 0, 1, 1], [], []>} : vector<2x32xf32>, vector<32x10xf32>, vector<2x10xf32> -> vector<2x10xf32>
    %c0_17 = arith.constant 0 : index
    %c0_18 = arith.constant 0 : index
    %54 = vector.load %arg7[%c0_17, %c0_18] : memref<1x10xf32, #tpu.memory_space<vmem>>, vector<1x10xf32>
    %55 = vector.broadcast %54 : vector<1x10xf32> to vector<2x10xf32>
    %56 = arith.addf %53, %55 : vector<2x10xf32>
    %cst_19 = arith.constant dense<0xFF800000> : vector<2xf32>
    %57 = vector.multi_reduction <maximumf>, %56, %cst_19 [1] : vector<2x10xf32> to vector<2xf32>
    %58 = vector.shape_cast %57 : vector<2xf32> to vector<2x1xf32>
    %59 = vector.broadcast %58 : vector<2x1xf32> to vector<2x10xf32>
    %60 = arith.subf %56, %59 : vector<2x10xf32>
    %61 = math.exp %60 : vector<2x10xf32>
    %cst_20 = arith.constant dense<0.000000e+00> : vector<2xf32>
    %62 = vector.multi_reduction <add>, %61, %cst_20 [1] : vector<2x10xf32> to vector<2xf32>
    %63 = vector.shape_cast %62 : vector<2xf32> to vector<2x1xf32>
    %64 = math.log %63 : vector<2x1xf32>
    %65 = vector.broadcast %64 : vector<2x1xf32> to vector<2x10xf32>
    %66 = arith.subf %60, %65 : vector<2x10xf32>
    %c0_21 = arith.constant 0 : index
    %c0_22 = arith.constant 0 : index
    %67 = vector.load %arg8[%c0_21, %c0_22] : memref<2x10xf32, #tpu.memory_space<vmem>>, vector<2x10xf32>
    tpu.vector_store %arg8[%c0_21, %c0_22], %66 {strides = array<i32>} : memref<2x10xf32, #tpu.memory_space<vmem>>, vector<2x10xf32>,
    return
  }
}

</mosaic_0001>

<bundles_post_ra>
// kernel: tpu_custom_call.1
= control target key start
LH: loop header
LB: loop body
LE: loop exit
PB: predicated region body
PF: predicated region fallthrough
CT: control target
= control target key end

     0   :  { %13 = vsyncpa [#allocation4], 0  ;;  %s1243_s0 = inlined_call_operand.vmem [shape: f32[2,971], index: 0, kind: input, shape index: {}]   ;;  %s1244_s1 = inlined_call_operand.vmem [shape: f32[2], index: 1, kind: input, shape index: {}]   ;;  %s1245_s2 = inlined_call_operand.vmem [shape: f32[96], index: 2, kind: input, shape index: {}]   ;;  %s1246_s3 = inlined_call_operand.vmem [shape: f32[32], index: 3, kind: input, shape index: {}]   ;;  %s1247_s4 = inlined_call_operand.vmem [shape: f32[32], index: 4, kind: input, shape index: {}]   ;;  %s1248_s5 = inlined_call_operand.vmem [shape: f32[32], index: 5, kind: input, shape index: {}]   ;;  %s1249_s6 = inlined_call_operand.vmem [shape: f32[32,10], index: 6, kind: input, shape index: {}]   ;;  %s1250_s7 = inlined_call_operand.vmem [shape: f32[1,10], index: 7, kind: input, shape index: {}]   ;;  %s1251_s8 = inlined_call_operand.hbm [shape: f32[2,10], index: 8, kind: output, shape index: {}]  }
   0x1   :  { %14 = vsyncpa [#allocation6], 0 }
   0x2   :  { %15 = vsyncpa [#allocation9], 0  ;;  %s33_s29 = sshll.u32 %s1245_s2, 4  ;;  %s34_s29 = int_to_ptr.vmem [resolvable:$true] %s33_s29 }
   0x3   :  { %16 = vsyncpa [#allocation3], 0  ;;  %s51_s10 = sshll.u32 %s1247_s4, 4  ;;  %s942_s11 = smov [#allocation5]   ;;  %s52_s10 = int_to_ptr.vmem [resolvable:$true] %s51_s10 }
   0x4   :  { %36 = dma.vmem_to_smem %s34_s29, 16, %s942_s11, [#allocation6]  }
   0x5   :  { %s943_s12 = smov [#allocation8]   ;;  %s24_s15 = sshll.u32 %s1244_s1, 4  ;;  %s25_s15 = int_to_ptr.vmem [resolvable:$true] %s24_s15 }
   0x6   :  { %54 = dma.vmem_to_smem %s52_s10, 16, %s943_s12, [#allocation9]  }
   0x7   :  { %s42_s2 = sshll.u32 %s1246_s3, 4  ;;  %s944_s18 = smov [#allocation2]   ;;  %s43_s2 = int_to_ptr.vmem [resolvable:$true] %s42_s2 }
   0x8   :  { %27 = dma.vmem_to_smem %s25_s15, 16, %s944_s18, [#allocation4]  }
   0x9   :  { %s945_s19 = smov [#allocation7]   ;;  %s60_s21 = sshll.u32 %s1248_s5, 4  ;;  %s61_s21 = int_to_ptr.vmem [resolvable:$true] %s60_s21 }
   0xa   :  { %45 = dma.vmem_to_smem %s43_s2, 16, %s945_s19, [#allocation6]  }
   0xb   :  { %s946_s22 = smov [#allocation10]  }
   0xc   :  { %63 = dma.vmem_to_smem %s61_s21, 16, %s946_s22, [#allocation9]  }
   0xd   :  { %926 = dma.done.wait [#allocation4], 16  }
   0xe   :  { %927 = vsyncadd [#allocation4], 4294967280 }
   0xf   :  { %928 = dma.done.wait [#allocation6], 32  }
  0x10   :  { %929 = vsyncadd [#allocation6], 4294967264 }
  0x11   :  { %930 = dma.done.wait [#allocation9], 32  }
  0x12   :  { %931 = vsyncadd [#allocation9], 4294967264 }
  0x13   :  { %88 = sfence }
  0x14   :  { %v1018_v0 = vld [vmem:[%s1243_s0] sm:$0xff]  ;;  %v1023_v1 = vld [vmem:[%s1243_s0 + $0x8] sm:$0xff]  ;;  %vm112_vm0 = vcmask 1041408   ;;  %vm126_vm1 = vcmask 607232   ;;  %v947_v25 = vmov 1942.0   ;;  %s206_s29 = sld [smem:[#allocation2]] }
  0x15   :  { %93 = vst [vmem:[#allocation1] ss:$4 sm:$0xff] %v1018_v0  ;;  %819 = vrcp.f32 %v947_v25  ;;  %s770_s30 = sld [smem:[#allocation2 + $0x1]]  ;;  %s948_s13 = smov 127   ;;  %vm264_vm6 = vcmask 590848   ;;  %vm303_vm7 = vcmask 1039360  }
  0x16   :  { %95 = vst [vmem:[#allocation1 + $0x20] ss:$4 sm:$0xff] %v1023_v1  ;;  %s949_s14 = smov 126   ;;  %vm370_vm8 = vcmask 1031168   ;;  %s1145_s2 = smov 0  }
  0x1b   :  { %v820_v26 = vpop.eup %819 }
  0x1c   :  { %v96_v2 = vld.sshfl [vmem:[#allocation1] sm:$0xff pattern:$0x73625140]  ;;  %v97_v3 = vld.sshfl [vmem:[#allocation1 + $0x8] sm:$0xff pattern:$0x73625140]  ;;  %vm143_vm2 = vweird.f32 %v820_v26 }
  0x1d   :  { %v98_v4 = vld.sshfl [vmem:[#allocation1 + $0x10] sm:$0xff pattern:$0x73625140]  ;;  %v99_v5 = vld.sshfl [vmem:[#allocation1 + $0x18] sm:$0xff pattern:$0x73625140] }
  0x1e   :  { %v113_v6 = vsel %vm112_vm0, %v96_v2, 0.0  ;;  %v114_v7 = vsel %vm112_vm0, %v97_v3, 0.0  ;;  %v116_v8 = vsel %vm112_vm0, %v98_v4, 0.0  ;;  %v100_v9 = vld.sshfl [vmem:[#allocation1 + $0x20] sm:$0xff pattern:$0x73625140] }
  0x1f   :  { %v115_v10 = vadd.f32 %v114_v7, %v113_v6  ;;  %v118_v11 = vsel %vm112_vm0, %v99_v5, 0.0  ;;  %v101_v12 = vld.sshfl [vmem:[#allocation1 + $0x28] sm:$0xff pattern:$0x73625140]  ;;  %v120_v14 = vsel %vm112_vm0, %v100_v9, 0.0  ;;  %v139_v27 = vmul.f32 1942.0, %v820_v26 }
  0x20   :  { %v102_v15 = vld.sshfl [vmem:[#allocation1 + $0x30] sm:$0xff pattern:$0x73625140]  ;;  %v122_v17 = vsel %vm112_vm0, %v101_v12, 0.0 }
  0x21   :  { %v117_v13 = vadd.f32 %v116_v8, %v115_v10  ;;  %v103_v18 = vld.sshfl [vmem:[#allocation1 + $0x38] sm:$0xff pattern:$0x73625140]  ;;  %v124_v20 = vsel %vm112_vm0, %v102_v15, 0.0  ;;  %v140_v28 = vsub.f32 1.0, %v139_v27 }
  0x22   :  { %v127_v22 = vsel %vm126_vm1, %v103_v18, 0.0 }
  0x23   :  { %v119_v16 = vadd.f32 %v118_v11, %v117_v13  ;;  %v141_v32 = vmul.f32 %v820_v26, %v140_v28 }
  0x25   :  { %v121_v19 = vadd.f32 %v120_v14, %v119_v16  ;;  %v142_v35 = vadd.f32 %v820_v26, %v141_v32 }
  0x27   :  { %v123_v21 = vadd.f32 %v122_v17, %v121_v19  ;;  %v144_v38 = vsel %vm143_vm2, %v820_v26, %v142_v35 }
  0x29   :  { %v125_v23 = vadd.f32 %v124_v20, %v123_v21 }
  0x2b   :  { %v128_v24 = vadd.f32 %v127_v22, %v125_v23 }
  0x2d   :  { %129 = vadd.xlane.f32.xlu0 %v128_v24 }
  0xa0   :  { %v130_v29 = vpop.xlane.xlu0 %129 }
  0xa1   :  { %v131_v30 = vrot.slane %v130_v29, 4 }
  0xa3   :  { %v132_v31 = vadd.f32 %v131_v30, %v130_v29 }
  0xa5   :  { %v133_v33 = vrot.slane %v132_v31, 2 }
  0xa7   :  { %v134_v34 = vadd.f32 %v133_v33, %v132_v31 }
  0xa9   :  { %v135_v36 = vrot.slane %v134_v34, 1 }
  0xab   :  { %v136_v37 = vadd.f32 %v135_v36, %v134_v34 }
  0xad   :  { %772 = vpush %v136_v37 }
  0xae   :  { %774 = vpush %v144_v38 }
  0xde   :  { %s773_s0 = spop %772 }
  0xdf   :  { %s1035_s5 = spop %774 }
  0xe0   :  { %s1038_s25 = smul.f32 %s1035_s5, %s773_s0 }
  0xe2   :  { %v147_v39 = vstv %s1038_s25 }
  0xe3   :  { %v148_v40 = vsub.f32 %v1018_v0, %v147_v39  ;;  %v149_v41 = vsub.f32 %v1023_v1, %v147_v39 }
  0xe5   :  { %v150_v42 = vmul.f32 %v148_v40, %v148_v40  ;;  %v151_v43 = vmul.f32 %v149_v41, %v149_v41 }
  0xe7   :  { %154 = vst [vmem:[#allocation1] ss:$4 sm:$0xff] %v150_v42 }
  0xe8   :  { %156 = vst [vmem:[#allocation1 + $0x20] ss:$4 sm:$0xff] %v151_v43 }
  0xee   :  { %v157_v44 = vld.sshfl [vmem:[#allocation1] sm:$0xff pattern:$0x73625140]  ;;  %v158_v45 = vld.sshfl [vmem:[#allocation1 + $0x8] sm:$0xff pattern:$0x73625140] }
  0xef   :  { %v159_v46 = vld.sshfl [vmem:[#allocation1 + $0x10] sm:$0xff pattern:$0x73625140]  ;;  %v173_v47 = vsel %vm112_vm0, %v157_v44, 0.0  ;;  %v174_v48 = vsel %vm112_vm0, %v158_v45, 0.0 }
  0xf0   :  { %v160_v49 = vld.sshfl [vmem:[#allocation1 + $0x18] sm:$0xff pattern:$0x73625140]  ;;  %v175_v50 = vadd.f32 %v174_v48, %v173_v47  ;;  %v176_v51 = vsel %vm112_vm0, %v159_v46, 0.0 }
  0xf1   :  { %v161_v52 = vld.sshfl [vmem:[#allocation1 + $0x20] sm:$0xff pattern:$0x73625140]  ;;  %v178_v54 = vsel %vm112_vm0, %v160_v49, 0.0 }
  0xf2   :  { %v177_v53 = vadd.f32 %v176_v51, %v175_v50  ;;  %v162_v55 = vld.sshfl [vmem:[#allocation1 + $0x28] sm:$0xff pattern:$0x73625140]  ;;  %v180_v57 = vsel %vm112_vm0, %v161_v52, 0.0 }
  0xf3   :  { %v163_v58 = vld.sshfl [vmem:[#allocation1 + $0x30] sm:$0xff pattern:$0x73625140]  ;;  %v182_v60 = vsel %vm112_vm0, %v162_v55, 0.0 }
  0xf4   :  { %v179_v56 = vadd.f32 %v178_v54, %v177_v53  ;;  %v164_v61 = vld.sshfl [vmem:[#allocation1 + $0x38] sm:$0xff pattern:$0x73625140]  ;;  %v184_v63 = vsel %vm112_vm0, %v163_v58, 0.0 }
  0xf5   :  { %v186_v3 = vsel %vm126_vm1, %v164_v61, 0.0 }
  0xf6   :  { %v181_v59 = vadd.f32 %v180_v57, %v179_v56 }
  0xf8   :  { %v183_v62 = vadd.f32 %v182_v60, %v181_v59 }
  0xfa   :  { %v185_v2 = vadd.f32 %v184_v63, %v183_v62 }
  0xfc   :  { %v187_v4 = vadd.f32 %v186_v3, %v185_v2 }
  0xfe   :  { %188 = vadd.xlane.f32.xlu0 %v187_v4 }
 0x171   :  { %v189_v5 = vpop.xlane.xlu0 %188 }
 0x172   :  { %v190_v6 = vrot.slane %v189_v5, 4 }
 0x174   :  { %v191_v7 = vadd.f32 %v190_v6, %v189_v5 }
 0x176   :  { %v192_v8 = vrot.slane %v191_v7, 2 }
 0x178   :  { %v193_v9 = vadd.f32 %v192_v8, %v191_v7 }
 0x17a   :  { %v194_v10 = vrot.slane %v193_v9, 1 }
 0x17c   :  { %v195_v11 = vadd.f32 %v194_v10, %v193_v9 }
 0x17e   :  { %776 = vpush %v195_v11 }
 0x1af   :  { %s777_s26 = spop %776 }
 0x1b0   :  { %s205_s27 = smul.f32 %s777_s26, %s1035_s5 }
 0x1b2   :  { %s207_s28 = sadd.f32 1e-05, %s205_s27 }
 0x1b4   :  { %v208_v12 = vstv %s207_s28 }
 0x1b5   :  { %821 = vrsqrt.f32 %v208_v12  ;;  %vm215_vm4 = vweird.f32 %v208_v12 }
 0x1bb   :  { %v822_v13 = vpop.eup %821 }
 0x1bc   :  { %v210_v14 = vmul.f32 %v822_v13, %v208_v12  ;;  %vm216_vm3 = vweird.f32 %v822_v13 }
 0x1bd   :  { %vm217_vm5 = vmor %vm215_vm4, %vm216_vm3 }
 0x1be   :  { %v211_v15 = vmul.f32 %v822_v13, %v210_v14 }
 0x1c0   :  { %v212_v16 = vmul.f32 0.5, %v211_v15 }
 0x1c2   :  { %v213_v17 = vsub.f32 1.5, %v212_v16 }
 0x1c4   :  { %v214_v18 = vmul.f32 %v822_v13, %v213_v17 }
 0x1c6   :  { %v218_v19 = vsel %vm217_vm5, %v822_v13, %v214_v18 }
 0x1c7   :  { %778 = vpush %v218_v19 }
 0x1f8   :  { %s779_s9 = spop %778 }
 0x1f9   :  { %s220_s10 = smul.f32 %s779_s9, %s206_s29 }
 0x1fb   :  { %s222_s11 = smul.f32 %s220_s10, %s1038_s25  ;;  %v224_v20 = vstv %s220_s10 }
 0x1fc   :  { %v225_v21 = vmul.f32 %v224_v20, %v1018_v0  ;;  %v226_v22 = vmul.f32 %v224_v20, %v1023_v1 }
 0x1fd   :  { %s223_s12 = ssub.f32 %s770_s30, %s222_s11 }
 0x1ff   :  { %v227_v23 = vstv %s223_s12 }
 0x200   :  { %v1055_v24 = vadd.f32 %v227_v23, %v225_v21  ;;  %v1057_v25 = vadd.f32 %v227_v23, %v226_v22 }
 0x202   :  { %232 = vst [vmem:[#allocation1] ss:$4 sm:$0xff] %v1055_v24 }
 0x203   :  { %234 = vst [vmem:[#allocation1 + $0x20] ss:$4 sm:$0xff] %v1057_v25 }
 0x209   :  { %v235_v26 = vld.sshfl [vmem:[#allocation1] sm:$0xff pattern:$0x73625140]  ;;  %v236_v27 = vld.sshfl [vmem:[#allocation1 + $0x8] sm:$0xff pattern:$0x73625140] }
 0x20a   :  { %v237_v28 = vld.sshfl [vmem:[#allocation1 + $0x10] sm:$0xff pattern:$0x73625140]  ;;  %v238_v29 = vld.sshfl [vmem:[#allocation1 + $0x18] sm:$0xff pattern:$0x73625140] }
 0x20b   :  { %276 = vst [vmem:[#allocation1] ss:$4 sm:$0xff] %v1055_v24  ;;  %v239_v30 = vld.sshfl [vmem:[#allocation1 + $0x20] sm:$0xff pattern:$0x73625140]  ;;  %v251_v0 = vsel %vm112_vm0, %v235_v26, 0.0 }
 0x20c   :  { %v240_v31 = vld.sshfl [vmem:[#allocation1 + $0x28] sm:$0xff pattern:$0x73625140]  ;;  %v241_v1 = vld.sshfl [vmem:[#allocation1 + $0x30] sm:$0xff pattern:$0x73625140] }
 0x20d   :  { %v242_v32 = vld.sshfl [vmem:[#allocation1 + $0x38] sm:$0xff pattern:$0x73625140]  ;;  %v252_v33 = vsel %vm112_vm0, %v236_v27, 0.0  ;;  %v254_v35 = vsel %vm112_vm0, %v237_v28, 0.0  ;;  %v256_v37 = vsel %vm112_vm0, %v238_v29, 0.0 }
 0x20e   :  { %278 = vst [vmem:[#allocation1 + $0x20] ss:$4 sm:$0xff] %v1057_v25  ;;  %v253_v34 = vadd.f32 %v252_v33, %v251_v0  ;;  %v258_v38 = vsel %vm112_vm0, %v239_v30, 0.0  ;;  %v260_v45 = vsel %vm112_vm0, %v240_v31, 0.0  ;;  %v262_v51 = vsel %vm112_vm0, %v241_v1, 0.0 }
 0x20f   :  { %v265_v53 = vsel %vm264_vm6, %v242_v32, 0.0 }
 0x210   :  { %v255_v36 = vadd.f32 %v254_v35, %v253_v34 }
 0x212   :  { %v281_v39 = vld.sshfl [vmem:[#allocation1 + $0x10] sm:$0xff pattern:$0x73625140]  ;;  %v279_v40 = vld.sshfl [vmem:[#allocation1] sm:$0xff pattern:$0x73625140]  ;;  %v257_v41 = vadd.f32 %v256_v37, %v255_v36 }
 0x213   :  { %291 = vrot.lane.b32.xlu2 %v281_v39, %s948_s13  ;;  %287 = vrot.lane.b32.xlu1 %v279_v40, %s948_s13  ;;  %v282_v42 = vld.sshfl [vmem:[#allocation1 + $0x18] sm:$0xff pattern:$0x73625140]  ;;  %v280_v43 = vld.sshfl [vmem:[#allocation1 + $0x8] sm:$0xff pattern:$0x73625140] }
 0x214   :  { %343 = vst [vmem:[#allocation1] ss:$4 sm:$0xff] %v1055_v24  ;;  %v259_v44 = vadd.f32 %v258_v38, %v257_v41 }
 0x215   :  { %v283_v46 = vld.sshfl [vmem:[#allocation1 + $0x20] sm:$0xff pattern:$0x73625140]  ;;  %v284_v47 = vld.sshfl [vmem:[#allocation1 + $0x28] sm:$0xff pattern:$0x73625140] }
 0x216   :  { %v286_v48 = vld.sshfl [vmem:[#allocation1 + $0x38] sm:$0xff pattern:$0x73625140]  ;;  %v285_v49 = vld.sshfl [vmem:[#allocation1 + $0x30] sm:$0xff pattern:$0x73625140]  ;;  %v261_v50 = vadd.f32 %v260_v45, %v259_v44 }
 0x217   :  { %345 = vst [vmem:[#allocation1 + $0x20] ss:$4 sm:$0xff] %v1057_v25 }
 0x218   :  { %v263_v52 = vadd.f32 %v262_v51, %v261_v50 }
 0x21a   :  { %v266_v54 = vadd.f32 %v265_v53, %v263_v52 }
 0x21b   :  { %293 = vrot.lane.b32.xlu2 %v282_v42, %s948_s13  ;;  %289 = vrot.lane.b32.xlu1 %v280_v43, %s948_s13  ;;  %v347_v55 = vld.sshfl [vmem:[#allocation1 + $0x8] sm:$0xff pattern:$0x73625140]  ;;  %v348_v57 = vld.sshfl [vmem:[#allocation1 + $0x10] sm:$0xff pattern:$0x73625140] }
 0x21c   :  { %356 = vrot.lane.b32.xlu0 %v347_v55, %s949_s14  ;;  %v349_v58 = vld.sshfl [vmem:[#allocation1 + $0x18] sm:$0xff pattern:$0x73625140]  ;;  %v346_v59 = vld.sshfl [vmem:[#allocation1] sm:$0xff pattern:$0x73625140] }
 0x21e   :  { %v351_v56 = vld.sshfl [vmem:[#allocation1 + $0x28] sm:$0xff pattern:$0x73625140]  ;;  %v350_v60 = vld.sshfl [vmem:[#allocation1 + $0x20] sm:$0xff pattern:$0x73625140] }
 0x21f   :  { %v352_v61 = vld.sshfl [vmem:[#allocation1 + $0x30] sm:$0xff pattern:$0x73625140]  ;;  %v353_v62 = vld.sshfl [vmem:[#allocation1 + $0x38] sm:$0xff pattern:$0x73625140] }
 0x223   :  { %295 = vrot.lane.b32.xlu2 %v283_v46, %s948_s13  ;;  %299 = vrot.lane.b32.xlu1 %v285_v49, %s948_s13 }
 0x224   :  { %364 = vrot.lane.b32.xlu0 %v351_v56, %s949_s14 }
 0x22b   :  { %297 = vrot.lane.b32.xlu2 %v284_v47, %s948_s13  ;;  %358 = vrot.lane.b32.xlu1 %v348_v57, %s949_s14 }
 0x22c   :  { %301 = vrot.lane.b32.xlu0 %v286_v48, %s948_s13 }
 0x233   :  { %360 = vrot.lane.b32.xlu1 %v349_v58, %s949_s14  ;;  %354 = vrot.lane.b32.xlu2 %v346_v59, %s949_s14 }
 0x23b   :  { %362 = vrot.lane.b32.xlu1 %v350_v60, %s949_s14  ;;  %366 = vrot.lane.b32.xlu2 %v352_v61, %s949_s14 }
 0x243   :  { %368 = vrot.lane.b32.xlu1 %v353_v62, %s949_s14 }
 0x264   :  { %267 = vadd.xlane.f32.xlu2 %v266_v54 }
 0x26d   :  { %v292_v63 = vpop.permute.xlu2 %291 }
 0x275   :  { %v294_v2 = vpop.permute.xlu2 %293 }
 0x276   :  { %v306_v9 = vsel %vm303_vm7, %v292_v63, %v294_v2 }
 0x277   :  { %v322_v13 = vsel %vm112_vm0, %v306_v9, 0.0 }
 0x27d   :  { %v296_v4 = vpop.permute.xlu2 %295 }
 0x27e   :  { %v307_v14 = vsel %vm303_vm7, %v294_v2, %v296_v4 }
 0x27f   :  { %v324_v18 = vsel %vm112_vm0, %v307_v14, 0.0 }
 0x285   :  { %v288_v3 = vpop.permute.xlu1 %287  ;;  %v298_v16 = vpop.permute.xlu2 %297 }
 0x286   :  { %v308_v20 = vsel %vm303_vm7, %v296_v4, %v298_v16 }
 0x287   :  { %v326_v23 = vsel %vm112_vm0, %v308_v20, 0.0  ;;  %v410_v20 = vlaneseq }
 0x28d   :  { %v290_v5 = vpop.permute.xlu1 %289  ;;  %v355_v34 = vpop.permute.xlu2 %354 }
 0x28e   :  { %v304_v6 = vsel %vm303_vm7, %v288_v3, %v290_v5  ;;  %v305_v7 = vsel %vm303_vm7, %v290_v5, %v292_v63  ;;  %v357_v8 = vpop.permute.xlu0 %356 }
 0x28f   :  { %v319_v10 = vsel %vm112_vm0, %v304_v6, 0.0  ;;  %v320_v11 = vsel %vm112_vm0, %v305_v7, 0.0  ;;  %v371_v37 = vsel %vm370_vm8, %v355_v34, %v357_v8 }
 0x290   :  { %v321_v12 = vadd.f32 %v320_v11, %v319_v10  ;;  %v386_v40 = vsel %vm112_vm0, %v371_v37, 0.0  ;;  %v950_v37 = vmov 0.0  }
 0x292   :  { %v323_v15 = vadd.f32 %v322_v13, %v321_v12 }
 0x294   :  { %v325_v21 = vadd.f32 %v324_v18, %v323_v15 }
 0x295   :  { %v300_v17 = vpop.permute.xlu1 %299  ;;  %v367_v47 = vpop.permute.xlu2 %366 }
 0x296   :  { %v365_v19 = vpop.permute.xlu0 %364  ;;  %v309_v22 = vsel %vm303_vm7, %v298_v16, %v300_v17  ;;  %v327_v26 = vadd.f32 %v326_v23, %v325_v21  ;;  %v1113_v21 = vand.u32 127, %v410_v20 }
 0x297   :  { %v328_v27 = vsel %vm112_vm0, %v309_v22, 0.0  ;;  %v376_v51 = vsel %vm370_vm8, %v365_v19, %v367_v47 }
 0x298   :  { %v329_v30 = vadd.f32 %v328_v27, %v327_v26  ;;  %v395_v53 = vsel %vm112_vm0, %v376_v51, 0.0  ;;  %v412_v22 = vadd.s32 128, %v1113_v21  ;;  %v413_v23 = vadd.s32 256, %v1113_v21 }
 0x299   :  { %v414_v26 = vadd.s32 384, %v1113_v21  ;;  %v415_v27 = vadd.s32 512, %v1113_v21 }
 0x29d   :  { %v359_v28 = vpop.permute.xlu1 %358 }
 0x29e   :  { %v302_v29 = vpop.permute.xlu0 %301  ;;  %v372_v36 = vsel %vm370_vm8, %v357_v8, %v359_v28 }
 0x29f   :  { %v310_v0 = vsel %vm303_vm7, %v300_v17, %v302_v29  ;;  %v332_v32 = vsel %vm264_vm6, %v302_v29, 0.0  ;;  %v387_v39 = vsel %vm112_vm0, %v372_v36, 0.0  ;;  %v417_v29 = vadd.s32 768, %v1113_v21 }
 0x2a0   :  { %v330_v31 = vsel %vm112_vm0, %v310_v0, 0.0  ;;  %v388_v42 = vadd.f32 %v387_v39, %v386_v40  ;;  %v419_v0 = vand.u32 7, %v1113_v21 }
 0x2a1   :  { %v331_v1 = vadd.f32 %v330_v31, %v329_v30  ;;  %v418_v30 = vadd.s32 896, %v1113_v21  ;;  %v420_v31 = vand.u32 7, %v412_v22 }
 0x2a2   :  { %vm427_vm9 = vcmp.eq.s32.totalorder %v419_v0, 0 }
 0x2a3   :  { %v333_v33 = vadd.f32 %v332_v32, %v331_v1  ;;  %v421_v1 = vand.u32 7, %v413_v23  ;;  %v422_v32 = vand.u32 7, %v414_v26  ;;  %v426_v36 = vand.u32 7, %v418_v30 }
 0x2a4   :  { %vm428_vm10 = vcmp.eq.s32.totalorder %v420_v31, 0 }
 0x2a5   :  { %334 = vadd.xlane.f32.xlu0 %v333_v33  ;;  %v361_v35 = vpop.permute.xlu1 %360  ;;  %v423_v33 = vand.u32 7, %v415_v27  ;;  %vm429_vm11 = vcmp.eq.s32.totalorder %v421_v1, 0  ;;  %vm430_vm12 = vcmp.eq.s32.totalorder %v422_v32, 0  ;;  %vm434_vm1 = vcmp.eq.s32.totalorder %v426_v36, 0 }
 0x2a6   :  { %v373_v38 = vsel %vm370_vm8, %v359_v28, %v361_v35  ;;  %v416_v28 = vadd.s32 640, %v1113_v21  ;;  %v1125_v39 = vsel %vm428_vm10, 0.008264462, %v950_v37  ;;  %v1127_v40 = vsel %vm429_vm11, 0.008264462, %v950_v37 }
 0x2a7   :  { %v389_v41 = vsel %vm112_vm0, %v373_v38, 0.0  ;;  %vm431_vm13 = vcmp.eq.s32.totalorder %v423_v33, 0  ;;  %v1123_v38 = vsel %vm427_vm9, 0.008264462, %v950_v37 }
 0x2a8   :  { %v390_v44 = vadd.f32 %v389_v41, %v388_v42  ;;  %v424_v34 = vand.u32 7, %v416_v28  ;;  %v1129_v41 = vsel %vm430_vm12, 0.008264462, %v950_v37  ;;  %v1131_v42 = vsel %vm431_vm13, 0.008264462, %v950_v37 }
 0x2aa   :  { %vm432_vm14 = vcmp.eq.s32.totalorder %v424_v34, 0 }
 0x2ad   :  { %v363_v43 = vpop.permute.xlu1 %362 }
 0x2ae   :  { %v374_v45 = vsel %vm370_vm8, %v361_v35, %v363_v43  ;;  %v375_v46 = vsel %vm370_vm8, %v363_v43, %v365_v19  ;;  %v425_v35 = vand.u32 7, %v417_v29  ;;  %v1133_v43 = vsel %vm432_vm14, 0.008264462, %v950_v37 }
 0x2af   :  { %v391_v48 = vsel %vm112_vm0, %v374_v45, 0.0  ;;  %v393_v50 = vsel %vm112_vm0, %v375_v46, 0.0  ;;  %v1137_v45 = vsel %vm434_vm1, 0.008264462, %v950_v37  ;;  %v1143_v46 = vmov 0.0  }
 0x2b0   :  { %v392_v49 = vadd.f32 %v391_v48, %v390_v44  ;;  %vm433_vm15 = vcmp.eq.s32.totalorder %v425_v35, 0 }
 0x2b1   :  { %v1135_v44 = vsel %vm433_vm15, 0.008264462, %v950_v37 }
 0x2b2   :  { %v394_v52 = vadd.f32 %v393_v50, %v392_v49 }
 0x2b4   :  { %v396_v56 = vadd.f32 %v395_v53, %v394_v52 }
 0x2b5   :  { %v369_v54 = vpop.permute.xlu1 %368 }
 0x2b6   :  { %v377_v55 = vsel %vm370_vm8, %v367_v47, %v369_v54  ;;  %v399_v59 = vsel %vm264_vm6, %v369_v54, 0.0 }
 0x2b7   :  { %v397_v57 = vsel %vm112_vm0, %v377_v55, 0.0 }
 0x2b8   :  { %v398_v58 = vadd.f32 %v397_v57, %v396_v56 }
 0x2ba   :  { %v400_v60 = vadd.f32 %v399_v59, %v398_v58 }
 0x2bc   :  { %401 = vadd.xlane.f32.xlu1 %v400_v60 }
 0x2d7   :  { %v268_v61 = vpop.xlane.xlu2 %267 }
 0x2d8   :  { %v269_v62 = vrot.slane %v268_v61, 4 }
 0x2da   :  { %v270_v63 = vadd.f32 %v269_v62, %v268_v61 }
 0x2dc   :  { %v271_v2 = vrot.slane %v270_v63, 2 }
 0x2de   :  { %v272_v3 = vadd.f32 %v271_v2, %v270_v63 }
 0x2e0   :  { %v273_v4 = vrot.slane %v272_v3, 1 }
 0x2e2   :  { %v274_v5 = vadd.f32 %v273_v4, %v272_v3 }
 0x2e4   :  { %780 = vpush %v274_v5 }
 0x315   :  { %s1111_s15 = spop %780 }
 0x318   :  { %v335_v6 = vpop.xlane.xlu0 %334 }
 0x319   :  { %v336_v7 = vrot.slane %v335_v6, 4 }
 0x31b   :  { %v337_v8 = vadd.f32 %v336_v7, %v335_v6 }
 0x31d   :  { %v338_v9 = vrot.slane %v337_v8, 2 }
 0x31f   :  { %v339_v10 = vadd.f32 %v338_v9, %v337_v8 }
 0x321   :  { %v340_v11 = vrot.slane %v339_v10, 1 }
 0x323   :  { %v341_v12 = vadd.f32 %v340_v11, %v339_v10 }
 0x325   :  { %782 = vpush %v341_v12 }
 0x32f   :  { %v402_v13 = vpop.xlane.xlu1 %401 }
 0x330   :  { %v403_v14 = vrot.slane %v402_v13, 4 }
 0x332   :  { %v404_v15 = vadd.f32 %v403_v14, %v402_v13 }
 0x334   :  { %v405_v16 = vrot.slane %v404_v15, 2 }
 0x336   :  { %v406_v17 = vadd.f32 %v405_v16, %v404_v15 }
 0x338   :  { %v407_v18 = vrot.slane %v406_v17, 1 }
 0x33a   :  { %v408_v19 = vadd.f32 %v407_v18, %v406_v17 }
 0x33c   :  { %784 = vpush %v408_v19 }
 0x356   :  { %s1139_s16 = spop %782 }
 0x36d   :  { %s1141_s17 = spop %784 }
 0x36e LB: > { %s450_s18 = smul.u32 3, %s940_s2  ;;  %s951_s24 = smov 126   ;;  %vm471_vm2 = vcmask 1045504   ;;  %vm643_vm9 = vcmask 1045508   ;;  %vm645_vm10 = vcmask 1043456   ;;  %vm621_vm11 = vcmask 1014784   ;;  %s940_s2 = sphi %s1145_s2, %s448_s2   ;;  %v936_v46 = vphi %v1143_v46, %v1252_v46  }
 0x36f   : > { %s952_s0 = smov 127   ;;  %s456_s26 = sld [smem:[#allocation7 + %s940_s2]]  ;;  %vm688_vm12 = vcmask 533504  }
 0x370   : > { %s454_s19 = sadd.s32 2, %s450_s18  ;;  %s452_s4 = sadd.s32 1, %s450_s18 }
 0x371   : > { %s455_s20 = sld [smem:[#allocation5 + %s454_s19]]  ;;  %s953_s14 = smov 124  }
 0x372   : > { %s453_s21 = sld [smem:[#allocation5 + %s452_s4]] }
 0x373   : > { %s451_s22 = sld [smem:[#allocation5 + %s450_s18]] }
 0x374   : > { %s558_s10 = sld [smem:[#allocation8 + %s940_s2]] }
 0x375   : > { %v497_v8 = vstv %s456_s26  ;;  %s576_s11 = sld [smem:[#allocation10 + %s940_s2]] }
 0x377   : > { %v479_v47 = vstv %s455_s20  ;;  %s503_s1 = smul.f32 %s1141_s17, %s455_s20 }
 0x378   : > { %v480_v48 = vmul.f32 %v479_v47, %v1055_v24  ;;  %v460_v49 = vstv %s453_s21  ;;  %s501_s3 = smul.f32 %s1139_s16, %s453_s21  ;;  %v481_v51 = vmul.f32 %v479_v47, %v1057_v25 }
 0x379   : > { %v461_v50 = vmul.f32 %v460_v49, %v1055_v24  ;;  %s500_s23 = smul.f32 %s1111_s15, %s451_s22  ;;  %v462_v52 = vmul.f32 %v460_v49, %v1057_v25  ;;  %v457_v55 = vstv %s451_s22 }
 0x37a   : > { %484 = vrot.lane.b32.xlu1 %v480_v48, %s951_s24  ;;  %v459_v59 = vmul.f32 %v457_v55, %v1057_v25  ;;  %v458_v62 = vmul.f32 %v457_v55, %v1055_v24 }
 0x37b   : > { %465 = vrot.lane.b32.xlu0 %v461_v50, %s952_s0  ;;  %s502_s5 = sadd.f32 %s501_s3, %s500_s23 }
 0x37d   : > { %s504_s25 = sadd.f32 %s503_s1, %s502_s5 }
 0x37f   : > { %s505_s27 = smul.f32 0.0005159959, %s504_s25 }
 0x381   : > { %s506_s28 = sadd.f32 %s505_s27, %s456_s26 }
 0x382   : > { %486 = vrot.lane.b32.xlu1 %v481_v51, %s951_s24 }
 0x383   : > { %467 = vrot.lane.b32.xlu0 %v462_v52, %s952_s0  ;;  %v507_v13 = vstv %s506_s28 }
 0x3ec   : > { %v485_v53 = vpop.permute.xlu1 %484 }
 0x3ed   : > { %v466_v54 = vpop.permute.xlu0 %465  ;;  %v488_v60 = vrot.slane %v485_v53, 2 }
 0x3ee   : > { %v469_v61 = vrot.slane %v466_v54, 2 }
 0x3f4   : > { %v487_v56 = vpop.permute.xlu1 %486 }
 0x3f5   : > { %v489_v57 = vrot.slane %v487_v56, 2  ;;  %v468_v58 = vpop.permute.xlu0 %467 }
 0x3f6   : > { %v470_v63 = vrot.slane %v468_v58, 2 }
 0x3f7   : > { %v490_v2 = vsel %vm471_vm2, %v488_v60, %v489_v57  ;;  %v492_v7 = vsel %vm370_vm8, %v487_v56, %v489_v57 }
 0x3f8   : > { %v472_v3 = vsel %vm471_vm2, %v469_v61, %v470_v63  ;;  %v474_v4 = vsel %vm303_vm7, %v468_v58, %v470_v63  ;;  %v491_v10 = vsel %vm370_vm8, %v485_v53, %v490_v2 }
 0x3f9   : > { %v473_v5 = vsel %vm303_vm7, %v466_v54, %v472_v3  ;;  %v478_v6 = vadd.f32 %v474_v4, %v459_v59 }
 0x3fa   : > { %v477_v9 = vadd.f32 %v473_v5, %v458_v62 }
 0x3fb   : > { %v496_v11 = vadd.f32 %v492_v7, %v478_v6  ;;  %v577_v7 = vstv %s576_s11 }
 0x3fc   : > { %v495_v12 = vadd.f32 %v491_v10, %v477_v9 }
 0x3fd   : > { %v499_v14 = vadd.f32 %v497_v8, %v496_v11 }
 0x3fe   : > { %v498_v15 = vadd.f32 %v497_v8, %v495_v12 }
 0x3ff   : > { %v509_v16 = vsub.f32 %v499_v14, %v507_v13 }
 0x400   : > { %v508_v17 = vsub.f32 %v498_v15, %v507_v13 }
 0x401   : > { %v511_v18 = vmul.f32 %v509_v16, %v509_v16 }
 0x402   : > { %v510_v19 = vmul.f32 %v508_v17, %v508_v17 }
 0x403   : > { %516 = vst [vmem:[#allocation1 + $0x20] ss:$4 sm:$0xff] %v511_v18 }
 0x404   : > { %514 = vst [vmem:[#allocation1] ss:$4 sm:$0xff] %v510_v19 }
 0x40a   : > { %v521_v0 = vld.sshfl [vmem:[#allocation1 + $0x20] sm:$0xff pattern:$0x73625140]  ;;  %v522_v32 = vld.sshfl [vmem:[#allocation1 + $0x28] sm:$0xff pattern:$0x73625140] }
 0x40b   : > { %v517_v20 = vld.sshfl [vmem:[#allocation1] sm:$0xff pattern:$0x73625140]  ;;  %v518_v22 = vld.sshfl [vmem:[#allocation1 + $0x8] sm:$0xff pattern:$0x73625140] }
 0x40c   : > { %v519_v23 = vld.sshfl [vmem:[#allocation1 + $0x10] sm:$0xff pattern:$0x73625140]  ;;  %v533_v26 = vsel %vm112_vm0, %v517_v20, 0.0  ;;  %v534_v27 = vsel %vm112_vm0, %v518_v22, 0.0  ;;  %v540_v34 = vsel %vm112_vm0, %v521_v0, 0.0 }
 0x40d   : > { %v520_v28 = vld.sshfl [vmem:[#allocation1 + $0x18] sm:$0xff pattern:$0x73625140]  ;;  %v535_v29 = vadd.f32 %v534_v27, %v533_v26  ;;  %v536_v30 = vsel %vm112_vm0, %v519_v23, 0.0  ;;  %v542_v37 = vsel %vm112_vm0, %v522_v32, 0.0 }
 0x40e   : > { %v538_v1 = vsel %vm112_vm0, %v520_v28, 0.0  ;;  %v523_v35 = vld.sshfl [vmem:[#allocation1 + $0x30] sm:$0xff pattern:$0x73625140] }
 0x40f   : > { %v537_v31 = vadd.f32 %v536_v30, %v535_v29  ;;  %v524_v47 = vld.sshfl [vmem:[#allocation1 + $0x38] sm:$0xff pattern:$0x73625140]  ;;  %v544_v49 = vsel %vm112_vm0, %v523_v35, 0.0  ;;  %v641_v35 = vrot.slane %v1137_v45, 2 }
 0x410   : > { %v546_v51 = vsel %vm264_vm6, %v524_v47, 0.0  ;;  %v636_v47 = vrot.slane %v1125_v39, 6 }
 0x411   : > { %v539_v33 = vadd.f32 %v538_v1, %v537_v31 }
 0x413   : > { %v541_v36 = vadd.f32 %v540_v34, %v539_v33  ;;  %v639_v33 = vrot.slane %v1133_v43, 6  ;;  %v640_v34 = vrot.slane %v1135_v44, 4 }
 0x415   : > { %v543_v48 = vadd.f32 %v542_v37, %v541_v36  ;;  %v647_v36 = vsel %vm112_vm0, %v1131_v42, %v639_v33  ;;  %v648_v37 = vsel %vm643_vm9, %v640_v34, %v641_v35 }
 0x417   : > { %v545_v50 = vadd.f32 %v544_v49, %v543_v48  ;;  %v637_v48 = vrot.slane %v1127_v40, 4  ;;  %v638_v49 = vrot.slane %v1129_v41, 2 }
 0x419   : > { %v547_v52 = vadd.f32 %v546_v51, %v545_v50 }
 0x41b   : > { %548 = vadd.xlane.f32.xlu2 %v547_v52  ;;  %v649_v52 = vsel %vm645_vm10, %v647_v36, %v648_v37 }
 0x48e   : > { %v549_v53 = vpop.xlane.xlu2 %548 }
 0x48f   : > { %v550_v54 = vrot.slane %v549_v53, 4 }
 0x491   : > { %v551_v55 = vadd.f32 %v550_v54, %v549_v53 }
 0x493   : > { %v552_v56 = vrot.slane %v551_v55, 2 }
 0x495   : > { %v553_v57 = vadd.f32 %v552_v56, %v551_v55  ;;  %v642_v55 = vsel %vm112_vm0, %v1123_v38, %v636_v47  ;;  %v644_v56 = vsel %vm643_vm9, %v637_v48, %v638_v49 }
 0x497   : > { %v554_v58 = vrot.slane %v553_v57, 1 }
 0x499   : > { %v555_v59 = vadd.f32 %v554_v58, %v553_v57 }
 0x49b   : > { %786 = vpush %v555_v59 }
 0x4cc   : > { %s787_s29 = spop %786 }
 0x4cd   : > { %s557_s30 = smul.f32 0.0005159959, %s787_s29 }
 0x4cf   : > { %s559_s9 = sadd.f32 1e-05, %s557_s30 }
 0x4d1   : > { %v560_v60 = vstv %s559_s9 }
 0x4d2   : > { %823 = vrsqrt.f32 %v560_v60  ;;  %vm567_vm4 = vweird.f32 %v560_v60 }
 0x4d8   : > { %v824_v61 = vpop.eup %823 }
 0x4d9   : > { %v562_v62 = vmul.f32 %v824_v61, %v560_v60  ;;  %vm568_vm3 = vweird.f32 %v824_v61 }
 0x4da   : > { %vm569_vm5 = vmor %vm567_vm4, %vm568_vm3 }
 0x4db   : > { %v563_v63 = vmul.f32 %v824_v61, %v562_v62 }
 0x4dd   : > { %v564_v2 = vmul.f32 0.5, %v563_v63 }
 0x4df   : > { %v565_v3 = vsub.f32 1.5, %v564_v2 }
 0x4e1   : > { %v566_v4 = vmul.f32 %v824_v61, %v565_v3 }
 0x4e3   : > { %v570_v5 = vsel %vm569_vm5, %v824_v61, %v566_v4  ;;  %v646_v61 = vsel %vm645_vm10, %v642_v55, %v644_v56 }
 0x4e4   : > { %788 = vpush %v570_v5 }
 0x515   : > { %s789_s12 = spop %788 }
 0x516   : > { %s572_s13 = smul.f32 %s789_s12, %s558_s10 }
 0x518   : > { %v573_v6 = vstv %s572_s13 }
 0x519   : > { %v574_v8 = vmul.f32 %v573_v6, %v508_v17  ;;  %v575_v9 = vmul.f32 %v573_v6, %v509_v16 }
 0x51b   : > { %v578_v10 = vadd.f32 %v577_v7, %v574_v8  ;;  %v579_v11 = vadd.f32 %v577_v7, %v575_v9 }
 0x51d   : > { %825 = vtanh.f32 %v578_v10 }
 0x51e   : > { %827 = vtanh.f32 %v579_v11 }
 0x523   : > { %v826_v12 = vpop.eup %825 }
 0x524   : > { %v828_v13 = vpop.eup %827  ;;  %584 = vrot.lane.b32.xlu2 %v826_v12, %s952_s0 }
 0x525   : > { %586 = vrot.lane.b32.xlu0 %v828_v13, %s952_s0 }
 0x57e   : > { %v585_v14 = vpop.permute.xlu2 %584 }
 0x57f   : > { %v588_v18 = vrot.slane %v585_v14, 2 }
 0x597   : > { %v587_v15 = vpop.permute.xlu0 %586 }
 0x598   : > { %v589_v19 = vrot.slane %v587_v15, 2 }
 0x59a   : > { %v592_v20 = vsel %vm303_vm7, %v587_v15, %v589_v19  ;;  %v590_v22 = vsel %vm471_vm2, %v588_v18, %v589_v19 }
 0x59b   : > { %v596_v17 = vmax.f32 %v828_v13, %v592_v20  ;;  %v591_v16 = vsel %vm303_vm7, %v585_v14, %v590_v22 }
 0x59c   : > { %v595_v23 = vmax.f32 %v826_v12, %v591_v16 }
 0x59d   : > { %601 = vrot.lane.b32.xlu0 %v596_v17, %s951_s24 }
 0x59e   : > { %599 = vrot.lane.b32.xlu1 %v595_v23, %s951_s24 }
 0x60f   : > { %v602_v26 = vpop.permute.xlu0 %601 }
 0x610   : > { %v604_v27 = vrot.slane %v602_v26, 2  ;;  %v600_v28 = vpop.permute.xlu1 %599 }
 0x611   : > { %v603_v29 = vrot.slane %v600_v28, 2 }
 0x612   : > { %v607_v30 = vsel %vm370_vm8, %v602_v26, %v604_v27 }
 0x613   : > { %v611_v0 = vmax.f32 %v596_v17, %v607_v30  ;;  %v605_v31 = vsel %vm471_vm2, %v603_v29, %v604_v27  ;;  %v693_v29 = vstv %s940_s2  ;;  %s448_s2 = sadd.s32 1, %s940_s2  }
 0x614   : > { %v606_v1 = vsel %vm370_vm8, %v600_v28, %v605_v31  ;;  %vm694_vm13 = vcmp.eq.s32.totalorder %v1113_v21, %v693_v29  ;;  %p445_p0 = scmp.ge.s32.totalorder %s448_s2, 32  }
 0x615   : > { %v610_v32 = vmax.f32 %v595_v23, %v606_v1  ;;  %616 = vrot.lane.b32.xlu0 %v611_v0, %s953_s14  ;;  %v700_v1 = vld [vmem:[%s1249_s6 + $0x18] sm:$0xff] (%p445_p0)  ;;  %v697_v33 = vld [vmem:[%s1249_s6] sm:$0xff] (%p445_p0)  ;;  %vm705_vm14 = vcmask (%p445_p0), 261120   ;;  %s750_s23 = sshll.u32 (%p445_p0), %s1251_s8, 4  ;;  %s751_s23 = int_to_ptr.hbm [resolvable:$true] %s750_s23 }
 0x616   :  { %721 = vmatpush.msra.mxu0 (%p445_p0), %v700_v1  ;;  %v829_v24 = vld [vmem:[%s1250_s7] ss:$0 sm:$0xff] (%p445_p0) }
 0x617   : > { %614 = vrot.lane.b32.xlu1 %v610_v32, %s953_s14 }
 0x687   : > { %v617_v50 = vpop.permute.xlu0 %616 }
 0x688   : > { %v619_v51 = vrot.slane %v617_v50, 2 }
 0x689   : > { %v615_v53 = vpop.permute.xlu1 %614 }
 0x68a   : > { %v623_v54 = vsel %vm621_vm11, %v617_v50, %v619_v51  ;;  %v618_v57 = vrot.slane %v615_v53, 2 }
 0x68b   : > { %v627_v58 = vmax.f32 %v611_v0, %v623_v54 }
 0x68c   : > { %v620_v59 = vsel %vm471_vm2, %v618_v57, %v619_v51 }
 0x68d   : > { %v653_v60 = vmul.f32 %v649_v52, %v627_v58  ;;  %v622_v62 = vsel %vm621_vm11, %v615_v53, %v620_v59 }
 0x68e   : > { %v626_v63 = vmax.f32 %v610_v32, %v622_v62  ;;  %v699_v32 = vld [vmem:[%s1249_s6 + $0x10] sm:$0xff] (%p445_p0) }
 0x68f   : > { %658 = vst [vmem:[#allocation1 + $0x20] ss:$4 sm:$0xff] %v653_v60  ;;  %722 = vmatpush.msra.mxu0 (%p445_p0), %v699_v32 }
 0x690   : > { %v652_v2 = vmul.f32 %v646_v61, %v626_v63 }
 0x692   : > { %656 = vst [vmem:[#allocation1] ss:$4 sm:$0xff] %v652_v2 }
 0x696   : > { %v663_v11 = vld.sshfl [vmem:[#allocation1 + $0x20] sm:$0xff pattern:$0x73625140]  ;;  %v664_v14 = vld.sshfl [vmem:[#allocation1 + $0x28] sm:$0xff pattern:$0x73625140] }
 0x697   : > { %v682_v18 = vsel %vm112_vm0, %v663_v11, 0.0  ;;  %v665_v19 = vld.sshfl [vmem:[#allocation1 + $0x30] sm:$0xff pattern:$0x73625140]  ;;  %v684_v22 = vsel %vm112_vm0, %v664_v14, 0.0 }
 0x698   : > { %v666_v17 = vld.sshfl [vmem:[#allocation1 + $0x38] sm:$0xff pattern:$0x73625140]  ;;  %v686_v23 = vsel %vm112_vm0, %v665_v19, 0.0 }
 0x699   : > { %v659_v3 = vld.sshfl [vmem:[#allocation1] sm:$0xff pattern:$0x73625140]  ;;  %v660_v4 = vld.sshfl [vmem:[#allocation1 + $0x8] sm:$0xff pattern:$0x73625140] }
 0x69a   : > { %v661_v5 = vld.sshfl [vmem:[#allocation1 + $0x10] sm:$0xff pattern:$0x73625140]  ;;  %v675_v6 = vsel %vm112_vm0, %v659_v3, 0.0  ;;  %v676_v7 = vsel %vm112_vm0, %v660_v4, 0.0  ;;  %v689_v27 = vsel %vm688_vm12, %v666_v17, 0.0 }
 0x69b   : > { %v662_v8 = vld.sshfl [vmem:[#allocation1 + $0x18] sm:$0xff pattern:$0x73625140]  ;;  %v677_v9 = vadd.f32 %v676_v7, %v675_v6  ;;  %v678_v10 = vsel %vm112_vm0, %v661_v5, 0.0 }
 0x69c   : > { %v680_v13 = vsel %vm112_vm0, %v662_v8, 0.0  ;;  %vm729_vm0 = vcmask (%p445_p0), 74752  }
 0x69d   : > { %v679_v12 = vadd.f32 %v678_v10, %v677_v9 }
 0x69f   : > { %v681_v15 = vadd.f32 %v680_v13, %v679_v12 }
 0x6a1   : > { %v683_v20 = vadd.f32 %v682_v18, %v681_v15 }
 0x6a3   : > { %v685_v16 = vadd.f32 %v684_v22, %v683_v20 }
 0x6a5   : > { %v687_v26 = vadd.f32 %v686_v23, %v685_v16 }
 0x6a7   : > { %v690_v28 = vadd.f32 %v689_v27, %v687_v26 }
 0x6a9   : > { %691 = vadd.xlane.f32.xlu1 %v690_v28 }
 0x71c   : > { %v692_v30 = vpop.xlane.xlu1 %691  ;;  %447 = sbr.rel (!%p445_p0) target bundleno = 878 (0x36e), region = 86 }
 0x71d   : > { %v695_v0 = vsel %vm694_vm13, %v692_v30, 0.0 }
 0x71e   : > { %v696_v31 = vadd.f32 %v936_v46, %v695_v0  }
 0x720   : > { %v1252_v46 = vmov %v696_v31 }
 0x721   :  { %v698_v46 = vld [vmem:[%s1249_s6 + $0x8] sm:$0xff]  ;;  %s954_s6 = smov [#allocation11]  }
 0x722   :  { %723 = vmatpush.msra.mxu0 %v698_v46  ;;  %s748_s17 = sshll.u32 %s954_s6, 4  ;;  %s749_s17 = int_to_ptr.vmem [resolvable:$true] %s748_s17 }
 0x724   :  { %724 = vmatpush.msra.mxu0 %v697_v33 }
 0x725   :  { %771 = vmatmul.msk.f32.vlgmr.msra.gmra.mxu0 %vm705_vm14, %v696_v31 }
 0x7a2   :  { %v726_v25 = vpop.f32.mrf.mxu0 }
 0x7a3   :  { %v727_v21 = vadd.f32 %v829_v24, %v726_v25 }
 0x7a5   :  { %v730_v38 = vsel %vm729_vm0, %v727_v21, -inf }
 0x7a6   :  { %731 = vmax.xlane.f32.xlu0 %v730_v38 }
 0x819   :  { %v732_v39 = vpop.xlane.xlu0 %731 }
 0x81a   :  { %v733_v40 = vsub.f32 %v727_v21, %v732_v39 }
 0x81c   :  { %v734_v41 = vmul.f32 1.442695, %v733_v40 }
 0x81e   :  { %830 = vpow2.f32 %v734_v41 }
 0x824   :  { %v831_v42 = vpop.eup %830 }
 0x825   :  { %v736_v43 = vsel %vm729_vm0, %v831_v42, 0.0 }
 0x826   :  { %737 = vadd.xlane.f32.xlu0 %v736_v43 }
 0x899   :  { %v738_v44 = vpop.xlane.xlu0 %737 }
 0x89a   :  { %832 = vlog2.f32 %v738_v44 }
 0x8a0   :  { %v833_v45 = vpop.eup %832 }
 0x8a1   :  { %v740_v34 = vmul.f32 0.6931472, %v833_v45 }
 0x8a3   :  { %v741_v35 = vsub.f32 %v733_v40, %v740_v34 }
 0x8a5   :  { %742 = vst.msk [vmem:[#allocation11] sm:$0x3] %vm729_vm0, %v741_v35 }
 0x8a6   :  { %753 = dma.vmem_to_hbm [thread:$0]  %s749_s17, 32, %s751_s23, [#allocation3]  }
 0x8a7   :  { %932 = dma.done.wait [#allocation3], 32  }
 0x8a8   :  { %933 = vsyncadd [#allocation3], 4294967264 }
 0x8a9   :  { %758 = vsyncpa [#allocation3], 1 }
 0x8aa   :  { %759 = vsyncpa [#allocation4], 1 }
 0x8ab   :  { %760 = vsyncpa [#allocation6], 1 }
 0x8ac   :  { %761 = vsyncpa [#allocation9], 1 }

</bundles_post_ra>
